<compile_context>
chip_gen: v6e
topology: v6e:2x2x1
jax: 0.10.0
libtpu: 0.0.40
codegen_flags: <defaults>
</compile_context>

<pallas_src>
import functools

import jax
import jax.numpy as jnp
from jax.experimental import pallas as pl
from jax.experimental.pallas import tpu as pltpu

ALPHA = 0.5
BETA = 0.5
NUM_CLASSES = 3

_LANE = 128
_SUBLANE = 8


def _tversky_sums_kernel(logits_ref, labels_ref, inter_ref, sump_ref, cnt_ref,
                         *, num_classes, s_blk, chunk, hw, tiles_per_split):
    """Per-tile softmax over classes + per-class partial accumulations.

    logits_ref: (1, C, s_blk, 128)   native dtype (upcast to f32 in-kernel)
    labels_ref: (1, s_blk, 128)      int8/int16/int32
    inter/sump/cnt refs: (1, 1, C, 8, 128) f32, resident across the pixel axis.
    """
    si = pl.program_id(1)
    ti = pl.program_id(2)
    t = si * tiles_per_split + ti               # global pixel-tile index

    @pl.when(ti == 0)
    def _init():
        inter_ref[...] = jnp.zeros_like(inter_ref)
        sump_ref[...] = jnp.zeros_like(sump_ref)
        cnt_ref[...] = jnp.zeros_like(cnt_ref)

    n_chunks = s_blk // chunk
    n_fold = chunk // _SUBLANE

    def fold(v):
        # (chunk, 128) -> (8, 128) via elementwise vreg adds only (no XLU).
        return jnp.sum(v.reshape(n_fold, _SUBLANE, _LANE), axis=0)

    def make_chunk_body(masked):
        def chunk_body(s):
            off = s * chunk
            if not isinstance(off, int):
                off = pl.multiple_of(off, chunk)
            lbl = labels_ref[0, pl.ds(off, chunk), :].astype(jnp.int32)
            xs = [logits_ref[0, ci, pl.ds(off, chunk), :].astype(jnp.float32)
                  for ci in range(num_classes)]
            # Softmax across classes as C-way elementwise ops (VPU + EUP only).
            m = xs[0]
            for ci in range(1, num_classes):
                m = jnp.maximum(m, xs[ci])
            es = [jnp.exp(x - m) for x in xs]
            z = es[0]
            for ci in range(1, num_classes):
                z = z + es[ci]
            zinv = pl.reciprocal(z, approx=True)        # EUP vrcp

            if masked:
                rows = jax.lax.broadcasted_iota(jnp.int32, (chunk, _LANE), 0)
                lanes = jax.lax.broadcasted_iota(jnp.int32, (chunk, _LANE), 1)
                pix = (t * s_blk + off + rows) * _LANE + lanes
                valid = pix < hw                        # boundary tile only

            for ci in range(num_classes):
                p = es[ci] * zinv
                is_cls = lbl == ci
                if masked:
                    # Selects (not multiplicative masks): NaN/garbage from
                    # ragged OOB reads cannot reach the accumulators.
                    sel = jnp.logical_and(is_cls, valid)
                    inter_ref[0, 0, ci] += fold(jnp.where(sel, p, 0.0))
                    sump_ref[0, 0, ci] += fold(jnp.where(valid, p, 0.0))
                    cnt_ref[0, 0, ci] += fold(sel.astype(jnp.float32))
                else:
                    inter_ref[0, 0, ci] += fold(jnp.where(is_cls, p, 0.0))
                    sump_ref[0, 0, ci] += fold(p)
                    cnt_ref[0, 0, ci] += fold(is_cls.astype(jnp.float32))
        return chunk_body

    def process(masked):
        body = make_chunk_body(masked)
        if n_chunks == 1:
            body(0)
        else:
            jax.lax.fori_loop(0, n_chunks,
                              lambda s, carry: (body(s), carry)[1], 0,
                              unroll=(n_chunks <= 16))

    tile_end_pix = (t + 1) * (s_blk * _LANE)
    interior = tile_end_pix <= hw

    @pl.when(interior)
    def _fast():                 # interior tiles: no mask work at all
        process(masked=False)

    @pl.when(jnp.logical_not(interior))
    def _boundary():             # at most one boundary tile per image
        process(masked=True)


def tversky_loss(logits, true, alpha=ALPHA, beta=BETA, eps=1e-7,
                 tile_sublanes=1024):
    """logits: (N, C, H, W) float; true: (N, 1, H, W) integer class labels."""
    n, c, h, w = logits.shape
    hw = h * w

    x = logits.reshape(n, c, hw)                    # free reshape (contiguous)
    lbl = true.reshape(n, hw)

    # Keep labels in their (possibly narrow) incoming dtype to cut HBM bytes;
    # widen only unsupported dtypes.
    if lbl.dtype in (jnp.dtype(jnp.int8), jnp.dtype(jnp.uint8)):
        sub_align = 32
    elif lbl.dtype in (jnp.dtype(jnp.int16), jnp.dtype(jnp.uint16)):
        sub_align = 16
    elif lbl.dtype == jnp.dtype(jnp.int32):
        sub_align = _SUBLANE
    else:
        lbl = lbl.astype(jnp.int32)
        sub_align = _SUBLANE

    # Pad only to a multiple of 128 lanes (a no-op for typical H*W); tiny
    # inputs are padded to one full (8,128) tile so the fold stays vreg-shaped.
    min_pix = _SUBLANE * _LANE
    hw_pad = max(pl.cdiv(hw, _LANE) * _LANE, min_pix)
    if hw_pad != hw:
        x = jnp.pad(x, ((0, 0), (0, 0), (0, hw_pad - hw)))
        lbl = jnp.pad(lbl, ((0, 0), (0, hw_pad - hw)))

    s_total = hw_pad // _LANE                       # >= 8
    x = x.reshape(n, c, s_total, _LANE)
    lbl = lbl.reshape(n, s_total, _LANE)

    # Compute granularity inside the kernel (bounds live intermediates).
    chunk = 64 if s_total >= 64 else (s_total // _SUBLANE) * _SUBLANE

    # Pixel-tile size: as large as allowed while keeping double-buffered
    # inputs under ~8 MiB (safe scoped-VMEM budget on v5e/v6e/v7x).
    row_bytes = (c * x.dtype.itemsize + lbl.dtype.itemsize) * _LANE * 2
    cap = max(chunk, (8 * 1024 * 1024 // row_bytes) // chunk * chunk)
    s_blk = min(tile_sublanes, cap, (s_total // chunk) * chunk)
    s_blk = max(chunk, (s_blk // chunk) * chunk)
    num_t = pl.cdiv(s_total, s_blk)

    # Packed label dtypes need 32/16-sublane-aligned blocks; fall back to i32.
    if sub_align > _SUBLANE and s_blk % sub_align != 0 and s_blk != s_total:
        lbl = lbl.astype(jnp.int32)

    # Give the second TensorCore (v7x) work when the batch is 1.
    n_split = 2 if (n == 1 and num_t >= 2 and num_t % 2 == 0) else 1
    tpc = num_t // n_split                          # pixel tiles per split

    acc_sds = jax.ShapeDtypeStruct((n, n_split, c, _SUBLANE, _LANE), jnp.float32)
    acc_spec = pl.BlockSpec((1, 1, c, _SUBLANE, _LANE),
                            lambda ni, si, ti: (ni, si, 0, 0, 0))
    kernel = functools.partial(_tversky_sums_kernel, num_classes=c, s_blk=s_blk,
                               chunk=chunk, hw=hw, tiles_per_split=tpc)

    inter, sump, cnt = pl.pallas_call(
        kernel,
        out_shape=(acc_sds, acc_sds, acc_sds),
        grid_spec=pltpu.PrefetchScalarGridSpec(
            num_scalar_prefetch=0,
            grid=(n, n_split, tpc),
            in_specs=[
                pl.BlockSpec((1, c, s_blk, _LANE),
                             lambda ni, si, ti: (ni, 0, si * tpc + ti, 0)),
                pl.BlockSpec((1, s_blk, _LANE),
                             lambda ni, si, ti: (ni, si * tpc + ti, 0)),
            ],
            out_specs=(acc_spec, acc_spec, acc_spec),
        ),
        compiler_params=pltpu.CompilerParams(
            dimension_semantics=("parallel", "parallel", "arbitrary"),
            vmem_limit_bytes=32 * 1024 * 1024),
    )(x, lbl)

    inter = jnp.sum(inter, axis=(0, 1, 3, 4))       # (C,)
    sump = jnp.sum(sump, axis=(0, 1, 3, 4))
    cnt = jnp.sum(cnt, axis=(0, 1, 3, 4))
    fps = sump - inter
    fns = cnt - inter
    tversky = jnp.mean(inter / (inter + alpha * fps + beta * fns + eps))
    return 1.0 - tversky


def tversky_loss_ref(logits, true, alpha=ALPHA, beta=BETA, eps=1e-7):
    """Pure-JAX reference matching the PyTorch forward."""
    c = logits.shape[1]
    one_hot = jax.nn.one_hot(true[:, 0], c, dtype=jnp.float32)       # (N,H,W,C)
    one_hot = jnp.transpose(one_hot, (0, 3, 1, 2))                    # (N,C,H,W)
    probas = jax.nn.softmax(logits.astype(jnp.float32), axis=1)
    dims = (0, 2, 3)
    inter = jnp.sum(probas * one_hot, dims)
    fps = jnp.sum(probas * (1.0 - one_hot), dims)
    fns = jnp.sum((1.0 - probas) * one_hot, dims)
    tversky = jnp.mean(inter / (inter + alpha * fps + beta * fns + eps))
    return 1.0 - tversky


if __name__ == "__main__":
    key = jax.random.PRNGKey(0)
    k1, k2 = jax.random.split(key)
    n, c, h, w = 2, NUM_CLASSES, 16, 16
    logits = jax.random.normal(k1, (n, c, h, w), dtype=jnp.float32)
    true = jax.random.randint(k2, (n, 1, h, w), 0, c, dtype=jnp.int32)

    loss = jax.block_until_ready(tversky_loss(logits, true))
    ref = tversky_loss_ref(logits, true)
    # approx reciprocal in the softmax denominator -> ~1e-4 relative tolerance.
    assert jnp.allclose(loss, ref, atol=2e-3, rtol=2e-3), (loss, ref)
    print("KERNEL_OK")
</pallas_src>

<mosaic_0001>
module attributes {stable_mosaic.version = 11 : i64} {
  func.func @_tversky_sums_kernel(%arg0: i32, %arg1: i32, %arg2: i32, %arg3: memref<1x3x8x128xf32, #tpu.memory_space<vmem>>, %arg4: memref<1x8x128xi32, #tpu.memory_space<vmem>>, %arg5: memref<1x1x3x8x128xf32, #tpu.memory_space<vmem>>, %arg6: memref<1x1x3x8x128xf32, #tpu.memory_space<vmem>>, %arg7: memref<1x1x3x8x128xf32, #tpu.memory_space<vmem>>) attributes {dimension_semantics = [#tpu.dimension_semantics<parallel>, #tpu.dimension_semantics<parallel>, #tpu.dimension_semantics<arbitrary>], iteration_bounds = array<i64: 2, 1, 1>, scalar_prefetch = 0 : i64, scratch_operands = 0 : i64, tpu.core_type = #tpu.core_type<tc>, window_params = [{transform_indices = @transform_0, window_bounds = array<i64: 1, 3, 8, 128>}, {transform_indices = @transform_1, window_bounds = array<i64: 1, 8, 128>}, {transform_indices = @transform_2, window_bounds = array<i64: 1, 1, 3, 8, 128>}, {transform_indices = @transform_3, window_bounds = array<i64: 1, 1, 3, 8, 128>}, {transform_indices = @transform_4, window_bounds = array<i64: 1, 1, 3, 8, 128>}]} {
    %c1_i32 = arith.constant 1 : i32
    %0 = arith.muli %arg1, %c1_i32 : i32
    %1 = arith.addi %0, %arg2 : i32
    %c0_i32 = arith.constant 0 : i32
    %2 = arith.cmpi eq, %arg2, %c0_i32 : i32
    %3 = arith.extui %2 : i1 to i32
    %c0_i32_0 = arith.constant 0 : i32
    %4 = arith.cmpi ne, %3, %c0_i32_0 : i32
    scf.if %4 {
      %cst = arith.constant 0.000000e+00 : f32
      %13 = vector.broadcast %cst : f32 to vector<1x1x3x8x128xf32>
      %c0 = arith.constant 0 : index
      %c0_4 = arith.constant 0 : index
      %c0_5 = arith.constant 0 : index
      %c0_6 = arith.constant 0 : index
      %c0_7 = arith.constant 0 : index
      %14 = vector.load %arg5[%c0, %c0_4, %c0_5, %c0_6, %c0_7] : memref<1x1x3x8x128xf32, #tpu.memory_space<vmem>>, vector<1x1x3x8x128xf32>
      tpu.vector_store %arg5[%c0, %c0_4, %c0_5, %c0_6, %c0_7], %13 {strides = array<i32>} : memref<1x1x3x8x128xf32, #tpu.memory_space<vmem>>, vector<1x1x3x8x128xf32>,
      %cst_8 = arith.constant 0.000000e+00 : f32
      %15 = vector.broadcast %cst_8 : f32 to vector<1x1x3x8x128xf32>
      %c0_9 = arith.constant 0 : index
      %c0_10 = arith.constant 0 : index
      %c0_11 = arith.constant 0 : index
      %c0_12 = arith.constant 0 : index
      %c0_13 = arith.constant 0 : index
      %16 = vector.load %arg6[%c0_9, %c0_10, %c0_11, %c0_12, %c0_13] : memref<1x1x3x8x128xf32, #tpu.memory_space<vmem>>, vector<1x1x3x8x128xf32>
      tpu.vector_store %arg6[%c0_9, %c0_10, %c0_11, %c0_12, %c0_13], %15 {strides = array<i32>} : memref<1x1x3x8x128xf32, #tpu.memory_space<vmem>>, vector<1x1x3x8x128xf32>,
      %cst_14 = arith.constant 0.000000e+00 : f32
      %17 = vector.broadcast %cst_14 : f32 to vector<1x1x3x8x128xf32>
      %c0_15 = arith.constant 0 : index
      %c0_16 = arith.constant 0 : index
      %c0_17 = arith.constant 0 : index
      %c0_18 = arith.constant 0 : index
      %c0_19 = arith.constant 0 : index
      %18 = vector.load %arg7[%c0_15, %c0_16, %c0_17, %c0_18, %c0_19] : memref<1x1x3x8x128xf32, #tpu.memory_space<vmem>>, vector<1x1x3x8x128xf32>
      tpu.vector_store %arg7[%c0_15, %c0_16, %c0_17, %c0_18, %c0_19], %17 {strides = array<i32>} : memref<1x1x3x8x128xf32, #tpu.memory_space<vmem>>, vector<1x1x3x8x128xf32>,
    } else {
    }
    %c1_i32_1 = arith.constant 1 : i32
    %5 = arith.addi %1, %c1_i32_1 : i32
    %c1024_i32 = arith.constant 1024 : i32
    %6 = arith.muli %5, %c1024_i32 : i32
    %c256_i32 = arith.constant 256 : i32
    %7 = arith.cmpi sle, %6, %c256_i32 : i32
    %8 = arith.extui %7 : i1 to i32
    %c0_i32_2 = arith.constant 0 : i32
    %9 = arith.cmpi ne, %8, %c0_i32_2 : i32
    scf.if %9 {
      %c0 = arith.constant 0 : index
      %c0_4 = arith.constant 0 : index
      %c0_5 = arith.constant 0 : index
      %13 = vector.load %arg4[%c0, %c0_4, %c0_5] : memref<1x8x128xi32, #tpu.memory_space<vmem>>, vector<1x8x128xi32>
      %14 = vector.shape_cast %13 : vector<1x8x128xi32> to vector<8x128xi32>
      %c0_6 = arith.constant 0 : index
      %c0_7 = arith.constant 0 : index
      %c0_8 = arith.constant 0 : index
      %c0_9 = arith.constant 0 : index
      %15 = vector.load %arg3[%c0_6, %c0_7, %c0_8, %c0_9] : memref<1x3x8x128xf32, #tpu.memory_space<vmem>>, vector<1x1x8x128xf32>
      %16 = vector.shape_cast %15 : vector<1x1x8x128xf32> to vector<8x128xf32>
      %c0_10 = arith.constant 0 : index
      %c1 = arith.constant 1 : index
      %c0_11 = arith.constant 0 : index
      %c0_12 = arith.constant 0 : index
      %17 = vector.load %arg3[%c0_10, %c1, %c0_11, %c0_12] : memref<1x3x8x128xf32, #tpu.memory_space<vmem>>, vector<1x1x8x128xf32>
      %18 = vector.shape_cast %17 : vector<1x1x8x128xf32> to vector<8x128xf32>
      %c0_13 = arith.constant 0 : index
      %c2 = arith.constant 2 : index
      %c0_14 = arith.constant 0 : index
      %c0_15 = arith.constant 0 : index
      %19 = vector.load %arg3[%c0_13, %c2, %c0_14, %c0_15] : memref<1x3x8x128xf32, #tpu.memory_space<vmem>>, vector<1x1x8x128xf32>
      %20 = vector.shape_cast %19 : vector<1x1x8x128xf32> to vector<8x128xf32>
      %21 = arith.maximumf %16, %18 : vector<8x128xf32>
      %22 = arith.maximumf %21, %20 : vector<8x128xf32>
      %23 = arith.subf %16, %22 : vector<8x128xf32>
      %24 = math.exp %23 : vector<8x128xf32>
      %25 = arith.subf %18, %22 : vector<8x128xf32>
      %26 = math.exp %25 : vector<8x128xf32>
      %27 = arith.subf %20, %22 : vector<8x128xf32>
      %28 = math.exp %27 : vector<8x128xf32>
      %29 = arith.addf %24, %26 : vector<8x128xf32>
      %30 = arith.addf %29, %28 : vector<8x128xf32>
      %31 = tpu.reciprocal %30 {approx = true} : vector<8x128xf32> -> vector<8x128xf32>
      %32 = arith.mulf %24, %31 : vector<8x128xf32>
      %c0_i32_16 = arith.constant 0 : i32
      %33 = vector.broadcast %c0_i32_16 : i32 to vector<8x128xi32>
      %34 = arith.cmpi eq, %14, %33 : vector<8x128xi32>
      %c0_17 = arith.constant 0 : index
      %c0_18 = arith.constant 0 : index
      %c0_19 = arith.constant 0 : index
      %c0_20 = arith.constant 0 : index
      %c0_21 = arith.constant 0 : index
      %35 = vector.load %arg5[%c0_17, %c0_18, %c0_19, %c0_20, %c0_21] : memref<1x1x3x8x128xf32, #tpu.memory_space<vmem>>, vector<1x1x1x8x128xf32>
      %36 = vector.shape_cast %35 : vector<1x1x1x8x128xf32> to vector<8x128xf32>
      %cst = arith.constant 0.000000e+00 : f32
      %37 = vector.broadcast %cst : f32 to vector<8x128xf32>
      %38 = arith.select %34, %32, %37 : vector<8x128xi1>, vector<8x128xf32>
      %39 = vector.shape_cast %38 : vector<8x128xf32> to vector<1x8x128xf32>
      %cst_22 = arith.constant dense<0.000000e+00> : vector<8x128xf32>
      %40 = vector.multi_reduction <add>, %39, %cst_22 [0] : vector<1x8x128xf32> to vector<8x128xf32>
      %41 = arith.addf %36, %40 : vector<8x128xf32>
      %c0_23 = arith.constant 0 : index
      %c0_24 = arith.constant 0 : index
      %c0_25 = arith.constant 0 : index
      %c0_26 = arith.constant 0 : index
      %c0_27 = arith.constant 0 : index
      %42 = vector.load %arg5[%c0_23, %c0_24, %c0_25, %c0_26, %c0_27] : memref<1x1x3x8x128xf32, #tpu.memory_space<vmem>>, vector<1x1x1x8x128xf32>
      %43 = vector.shape_cast %42 : vector<1x1x1x8x128xf32> to vector<8x128xf32>
      %44 = vector.shape_cast %41 : vector<8x128xf32> to vector<1x1x1x8x128xf32>
      tpu.vector_store %arg5[%c0_23, %c0_24, %c0_25, %c0_26, %c0_27], %44 {strides = array<i32>} : memref<1x1x3x8x128xf32, #tpu.memory_space<vmem>>, vector<1x1x1x8x128xf32>,
      %c0_28 = arith.constant 0 : index
      %c0_29 = arith.constant 0 : index
      %c0_30 = arith.constant 0 : index
      %c0_31 = arith.constant 0 : index
      %c0_32 = arith.constant 0 : index
      %45 = vector.load %arg6[%c0_28, %c0_29, %c0_30, %c0_31, %c0_32] : memref<1x1x3x8x128xf32, #tpu.memory_space<vmem>>, vector<1x1x1x8x128xf32>
      %46 = vector.shape_cast %45 : vector<1x1x1x8x128xf32> to vector<8x128xf32>
      %47 = vector.shape_cast %32 : vector<8x128xf32> to vector<1x8x128xf32>
      %cst_33 = arith.constant dense<0.000000e+00> : vector<8x128xf32>
      %48 = vector.multi_reduction <add>, %47, %cst_33 [0] : vector<1x8x128xf32> to vector<8x128xf32>
      %49 = arith.addf %46, %48 : vector<8x128xf32>
      %c0_34 = arith.constant 0 : index
      %c0_35 = arith.constant 0 : index
      %c0_36 = arith.constant 0 : index
      %c0_37 = arith.constant 0 : index
      %c0_38 = arith.constant 0 : index
      %50 = vector.load %arg6[%c0_34, %c0_35, %c0_36, %c0_37, %c0_38] : memref<1x1x3x8x128xf32, #tpu.memory_space<vmem>>, vector<1x1x1x8x128xf32>
      %51 = vector.shape_cast %50 : vector<1x1x1x8x128xf32> to vector<8x128xf32>
      %52 = vector.shape_cast %49 : vector<8x128xf32> to vector<1x1x1x8x128xf32>
      tpu.vector_store %arg6[%c0_34, %c0_35, %c0_36, %c0_37, %c0_38], %52 {strides = array<i32>} : memref<1x1x3x8x128xf32, #tpu.memory_space<vmem>>, vector<1x1x1x8x128xf32>,
      %c0_39 = arith.constant 0 : index
      %c0_40 = arith.constant 0 : index
      %c0_41 = arith.constant 0 : index
      %c0_42 = arith.constant 0 : index
      %c0_43 = arith.constant 0 : index
      %53 = vector.load %arg7[%c0_39, %c0_40, %c0_41, %c0_42, %c0_43] : memref<1x1x3x8x128xf32, #tpu.memory_space<vmem>>, vector<1x1x1x8x128xf32>
      %54 = vector.shape_cast %53 : vector<1x1x1x8x128xf32> to vector<8x128xf32>
      %55 = arith.extui %34 : vector<8x128xi1> to vector<8x128xi32>
      %56 = arith.sitofp %55 : vector<8x128xi32> to vector<8x128xf32>
      %57 = vector.shape_cast %56 : vector<8x128xf32> to vector<1x8x128xf32>
      %cst_44 = arith.constant dense<0.000000e+00> : vector<8x128xf32>
      %58 = vector.multi_reduction <add>, %57, %cst_44 [0] : vector<1x8x128xf32> to vector<8x128xf32>
      %59 = arith.addf %54, %58 : vector<8x128xf32>
      %c0_45 = arith.constant 0 : index
      %c0_46 = arith.constant 0 : index
      %c0_47 = arith.constant 0 : index
      %c0_48 = arith.constant 0 : index
      %c0_49 = arith.constant 0 : index
      %60 = vector.load %arg7[%c0_45, %c0_46, %c0_47, %c0_48, %c0_49] : memref<1x1x3x8x128xf32, #tpu.memory_space<vmem>>, vector<1x1x1x8x128xf32>
      %61 = vector.shape_cast %60 : vector<1x1x1x8x128xf32> to vector<8x128xf32>
      %62 = vector.shape_cast %59 : vector<8x128xf32> to vector<1x1x1x8x128xf32>
      tpu.vector_store %arg7[%c0_45, %c0_46, %c0_47, %c0_48, %c0_49], %62 {strides = array<i32>} : memref<1x1x3x8x128xf32, #tpu.memory_space<vmem>>, vector<1x1x1x8x128xf32>,
      %63 = arith.mulf %26, %31 : vector<8x128xf32>
      %c1_i32_50 = arith.constant 1 : i32
      %64 = vector.broadcast %c1_i32_50 : i32 to vector<8x128xi32>
      %65 = arith.cmpi eq, %14, %64 : vector<8x128xi32>
      %c0_51 = arith.constant 0 : index
      %c0_52 = arith.constant 0 : index
      %c1_53 = arith.constant 1 : index
      %c0_54 = arith.constant 0 : index
      %c0_55 = arith.constant 0 : index
      %66 = vector.load %arg5[%c0_51, %c0_52, %c1_53, %c0_54, %c0_55] : memref<1x1x3x8x128xf32, #tpu.memory_space<vmem>>, vector<1x1x1x8x128xf32>
      %67 = vector.shape_cast %66 : vector<1x1x1x8x128xf32> to vector<8x128xf32>
      %cst_56 = arith.constant 0.000000e+00 : f32
      %68 = vector.broadcast %cst_56 : f32 to vector<8x128xf32>
      %69 = arith.select %65, %63, %68 : vector<8x128xi1>, vector<8x128xf32>
      %70 = vector.shape_cast %69 : vector<8x128xf32> to vector<1x8x128xf32>
      %cst_57 = arith.constant dense<0.000000e+00> : vector<8x128xf32>
      %71 = vector.multi_reduction <add>, %70, %cst_57 [0] : vector<1x8x128xf32> to vector<8x128xf32>
      %72 = arith.addf %67, %71 : vector<8x128xf32>
      %c0_58 = arith.constant 0 : index
      %c0_59 = arith.constant 0 : index
      %c1_60 = arith.constant 1 : index
      %c0_61 = arith.constant 0 : index
      %c0_62 = arith.constant 0 : index
      %73 = vector.load %arg5[%c0_58, %c0_59, %c1_60, %c0_61, %c0_62] : memref<1x1x3x8x128xf32, #tpu.memory_space<vmem>>, vector<1x1x1x8x128xf32>
      %74 = vector.shape_cast %73 : vector<1x1x1x8x128xf32> to vector<8x128xf32>
      %75 = vector.shape_cast %72 : vector<8x128xf32> to vector<1x1x1x8x128xf32>
      tpu.vector_store %arg5[%c0_58, %c0_59, %c1_60, %c0_61, %c0_62], %75 {strides = array<i32>} : memref<1x1x3x8x128xf32, #tpu.memory_space<vmem>>, vector<1x1x1x8x128xf32>,
      %c0_63 = arith.constant 0 : index
      %c0_64 = arith.constant 0 : index
      %c1_65 = arith.constant 1 : index
      %c0_66 = arith.constant 0 : index
      %c0_67 = arith.constant 0 : index
      %76 = vector.load %arg6[%c0_63, %c0_64, %c1_65, %c0_66, %c0_67] : memref<1x1x3x8x128xf32, #tpu.memory_space<vmem>>, vector<1x1x1x8x128xf32>
      %77 = vector.shape_cast %76 : vector<1x1x1x8x128xf32> to vector<8x128xf32>
      %78 = vector.shape_cast %63 : vector<8x128xf32> to vector<1x8x128xf32>
      %cst_68 = arith.constant dense<0.000000e+00> : vector<8x128xf32>
      %79 = vector.multi_reduction <add>, %78, %cst_68 [0] : vector<1x8x128xf32> to vector<8x128xf32>
      %80 = arith.addf %77, %79 : vector<8x128xf32>
      %c0_69 = arith.constant 0 : index
      %c0_70 = arith.constant 0 : index
      %c1_71 = arith.constant 1 : index
      %c0_72 = arith.constant 0 : index
      %c0_73 = arith.constant 0 : index
      %81 = vector.load %arg6[%c0_69, %c0_70, %c1_71, %c0_72, %c0_73] : memref<1x1x3x8x128xf32, #tpu.memory_space<vmem>>, vector<1x1x1x8x128xf32>
      %82 = vector.shape_cast %81 : vector<1x1x1x8x128xf32> to vector<8x128xf32>
      %83 = vector.shape_cast %80 : vector<8x128xf32> to vector<1x1x1x8x128xf32>
      tpu.vector_store %arg6[%c0_69, %c0_70, %c1_71, %c0_72, %c0_73], %83 {strides = array<i32>} : memref<1x1x3x8x128xf32, #tpu.memory_space<vmem>>, vector<1x1x1x8x128xf32>,
      %c0_74 = arith.constant 0 : index
      %c0_75 = arith.constant 0 : index
      %c1_76 = arith.constant 1 : index
      %c0_77 = arith.constant 0 : index
      %c0_78 = arith.constant 0 : index
      %84 = vector.load %arg7[%c0_74, %c0_75, %c1_76, %c0_77, %c0_78] : memref<1x1x3x8x128xf32, #tpu.memory_space<vmem>>, vector<1x1x1x8x128xf32>
      %85 = vector.shape_cast %84 : vector<1x1x1x8x128xf32> to vector<8x128xf32>
      %86 = arith.extui %65 : vector<8x128xi1> to vector<8x128xi32>
      %87 = arith.sitofp %86 : vector<8x128xi32> to vector<8x128xf32>
      %88 = vector.shape_cast %87 : vector<8x128xf32> to vector<1x8x128xf32>
      %cst_79 = arith.constant dense<0.000000e+00> : vector<8x128xf32>
      %89 = vector.multi_reduction <add>, %88, %cst_79 [0] : vector<1x8x128xf32> to vector<8x128xf32>
      %90 = arith.addf %85, %89 : vector<8x128xf32>
      %c0_80 = arith.constant 0 : index
      %c0_81 = arith.constant 0 : index
      %c1_82 = arith.constant 1 : index
      %c0_83 = arith.constant 0 : index
      %c0_84 = arith.constant 0 : index
      %91 = vector.load %arg7[%c0_80, %c0_81, %c1_82, %c0_83, %c0_84] : memref<1x1x3x8x128xf32, #tpu.memory_space<vmem>>, vector<1x1x1x8x128xf32>
      %92 = vector.shape_cast %91 : vector<1x1x1x8x128xf32> to vector<8x128xf32>
      %93 = vector.shape_cast %90 : vector<8x128xf32> to vector<1x1x1x8x128xf32>
      tpu.vector_store %arg7[%c0_80, %c0_81, %c1_82, %c0_83, %c0_84], %93 {strides = array<i32>} : memref<1x1x3x8x128xf32, #tpu.memory_space<vmem>>, vector<1x1x1x8x128xf32>,
      %94 = arith.mulf %28, %31 : vector<8x128xf32>
      %c2_i32 = arith.constant 2 : i32
      %95 = vector.broadcast %c2_i32 : i32 to vector<8x128xi32>
      %96 = arith.cmpi eq, %14, %95 : vector<8x128xi32>
      %c0_85 = arith.constant 0 : index
      %c0_86 = arith.constant 0 : index
      %c2_87 = arith.constant 2 : index
      %c0_88 = arith.constant 0 : index
      %c0_89 = arith.constant 0 : index
      %97 = vector.load %arg5[%c0_85, %c0_86, %c2_87, %c0_88, %c0_89] : memref<1x1x3x8x128xf32, #tpu.memory_space<vmem>>, vector<1x1x1x8x128xf32>
      %98 = vector.shape_cast %97 : vector<1x1x1x8x128xf32> to vector<8x128xf32>
      %cst_90 = arith.constant 0.000000e+00 : f32
      %99 = vector.broadcast %cst_90 : f32 to vector<8x128xf32>
      %100 = arith.select %96, %94, %99 : vector<8x128xi1>, vector<8x128xf32>
      %101 = vector.shape_cast %100 : vector<8x128xf32> to vector<1x8x128xf32>
      %cst_91 = arith.constant dense<0.000000e+00> : vector<8x128xf32>
      %102 = vector.multi_reduction <add>, %101, %cst_91 [0] : vector<1x8x128xf32> to vector<8x128xf32>
      %103 = arith.addf %98, %102 : vector<8x128xf32>
      %c0_92 = arith.constant 0 : index
      %c0_93 = arith.constant 0 : index
      %c2_94 = arith.constant 2 : index
      %c0_95 = arith.constant 0 : index
      %c0_96 = arith.constant 0 : index
      %104 = vector.load %arg5[%c0_92, %c0_93, %c2_94, %c0_95, %c0_96] : memref<1x1x3x8x128xf32, #tpu.memory_space<vmem>>, vector<1x1x1x8x128xf32>
      %105 = vector.shape_cast %104 : vector<1x1x1x8x128xf32> to vector<8x128xf32>
      %106 = vector.shape_cast %103 : vector<8x128xf32> to vector<1x1x1x8x128xf32>
      tpu.vector_store %arg5[%c0_92, %c0_93, %c2_94, %c0_95, %c0_96], %106 {strides = array<i32>} : memref<1x1x3x8x128xf32, #tpu.memory_space<vmem>>, vector<1x1x1x8x128xf32>,
      %c0_97 = arith.constant 0 : index
      %c0_98 = arith.constant 0 : index
      %c2_99 = arith.constant 2 : index
      %c0_100 = arith.constant 0 : index
      %c0_101 = arith.constant 0 : index
      %107 = vector.load %arg6[%c0_97, %c0_98, %c2_99, %c0_100, %c0_101] : memref<1x1x3x8x128xf32, #tpu.memory_space<vmem>>, vector<1x1x1x8x128xf32>
      %108 = vector.shape_cast %107 : vector<1x1x1x8x128xf32> to vector<8x128xf32>
      %109 = vector.shape_cast %94 : vector<8x128xf32> to vector<1x8x128xf32>
      %cst_102 = arith.constant dense<0.000000e+00> : vector<8x128xf32>
      %110 = vector.multi_reduction <add>, %109, %cst_102 [0] : vector<1x8x128xf32> to vector<8x128xf32>
      %111 = arith.addf %108, %110 : vector<8x128xf32>
      %c0_103 = arith.constant 0 : index
      %c0_104 = arith.constant 0 : index
      %c2_105 = arith.constant 2 : index
      %c0_106 = arith.constant 0 : index
      %c0_107 = arith.constant 0 : index
      %112 = vector.load %arg6[%c0_103, %c0_104, %c2_105, %c0_106, %c0_107] : memref<1x1x3x8x128xf32, #tpu.memory_space<vmem>>, vector<1x1x1x8x128xf32>
      %113 = vector.shape_cast %112 : vector<1x1x1x8x128xf32> to vector<8x128xf32>
      %114 = vector.shape_cast %111 : vector<8x128xf32> to vector<1x1x1x8x128xf32>
      tpu.vector_store %arg6[%c0_103, %c0_104, %c2_105, %c0_106, %c0_107], %114 {strides = array<i32>} : memref<1x1x3x8x128xf32, #tpu.memory_space<vmem>>, vector<1x1x1x8x128xf32>,
      %c0_108 = arith.constant 0 : index
      %c0_109 = arith.constant 0 : index
      %c2_110 = arith.constant 2 : index
      %c0_111 = arith.constant 0 : index
      %c0_112 = arith.constant 0 : index
      %115 = vector.load %arg7[%c0_108, %c0_109, %c2_110, %c0_111, %c0_112] : memref<1x1x3x8x128xf32, #tpu.memory_space<vmem>>, vector<1x1x1x8x128xf32>
      %116 = vector.shape_cast %115 : vector<1x1x1x8x128xf32> to vector<8x128xf32>
      %117 = arith.extui %96 : vector<8x128xi1> to vector<8x128xi32>
      %118 = arith.sitofp %117 : vector<8x128xi32> to vector<8x128xf32>
      %119 = vector.shape_cast %118 : vector<8x128xf32> to vector<1x8x128xf32>
      %cst_113 = arith.constant dense<0.000000e+00> : vector<8x128xf32>
      %120 = vector.multi_reduction <add>, %119, %cst_113 [0] : vector<1x8x128xf32> to vector<8x128xf32>
      %121 = arith.addf %116, %120 : vector<8x128xf32>
      %c0_114 = arith.constant 0 : index
      %c0_115 = arith.constant 0 : index
      %c2_116 = arith.constant 2 : index
      %c0_117 = arith.constant 0 : index
      %c0_118 = arith.constant 0 : index
      %122 = vector.load %arg7[%c0_114, %c0_115, %c2_116, %c0_117, %c0_118] : memref<1x1x3x8x128xf32, #tpu.memory_space<vmem>>, vector<1x1x1x8x128xf32>
      %123 = vector.shape_cast %122 : vector<1x1x1x8x128xf32> to vector<8x128xf32>
      %124 = vector.shape_cast %121 : vector<8x128xf32> to vector<1x1x1x8x128xf32>
      tpu.vector_store %arg7[%c0_114, %c0_115, %c2_116, %c0_117, %c0_118], %124 {strides = array<i32>} : memref<1x1x3x8x128xf32, #tpu.memory_space<vmem>>, vector<1x1x1x8x128xf32>,
    } else {
    }
    %true = arith.constant true
    %10 = arith.xori %7, %true : i1
    %11 = arith.extui %10 : i1 to i32
    %c0_i32_3 = arith.constant 0 : i32
    %12 = arith.cmpi ne, %11, %c0_i32_3 : i32
    scf.if %12 {
      %c0 = arith.constant 0 : index
      %c0_4 = arith.constant 0 : index
      %c0_5 = arith.constant 0 : index
      %13 = vector.load %arg4[%c0, %c0_4, %c0_5] : memref<1x8x128xi32, #tpu.memory_space<vmem>>, vector<1x8x128xi32>
      %14 = vector.shape_cast %13 : vector<1x8x128xi32> to vector<8x128xi32>
      %c0_6 = arith.constant 0 : index
      %c0_7 = arith.constant 0 : index
      %c0_8 = arith.constant 0 : index
      %c0_9 = arith.constant 0 : index
      %15 = vector.load %arg3[%c0_6, %c0_7, %c0_8, %c0_9] : memref<1x3x8x128xf32, #tpu.memory_space<vmem>>, vector<1x1x8x128xf32>
      %16 = vector.shape_cast %15 : vector<1x1x8x128xf32> to vector<8x128xf32>
      %c0_10 = arith.constant 0 : index
      %c1 = arith.constant 1 : index
      %c0_11 = arith.constant 0 : index
      %c0_12 = arith.constant 0 : index
      %17 = vector.load %arg3[%c0_10, %c1, %c0_11, %c0_12] : memref<1x3x8x128xf32, #tpu.memory_space<vmem>>, vector<1x1x8x128xf32>
      %18 = vector.shape_cast %17 : vector<1x1x8x128xf32> to vector<8x128xf32>
      %c0_13 = arith.constant 0 : index
      %c2 = arith.constant 2 : index
      %c0_14 = arith.constant 0 : index
      %c0_15 = arith.constant 0 : index
      %19 = vector.load %arg3[%c0_13, %c2, %c0_14, %c0_15] : memref<1x3x8x128xf32, #tpu.memory_space<vmem>>, vector<1x1x8x128xf32>
      %20 = vector.shape_cast %19 : vector<1x1x8x128xf32> to vector<8x128xf32>
      %21 = arith.maximumf %16, %18 : vector<8x128xf32>
      %22 = arith.maximumf %21, %20 : vector<8x128xf32>
      %23 = arith.subf %16, %22 : vector<8x128xf32>
      %24 = math.exp %23 : vector<8x128xf32>
      %25 = arith.subf %18, %22 : vector<8x128xf32>
      %26 = math.exp %25 : vector<8x128xf32>
      %27 = arith.subf %20, %22 : vector<8x128xf32>
      %28 = math.exp %27 : vector<8x128xf32>
      %29 = arith.addf %24, %26 : vector<8x128xf32>
      %30 = arith.addf %29, %28 : vector<8x128xf32>
      %31 = tpu.reciprocal %30 {approx = true} : vector<8x128xf32> -> vector<8x128xf32>
      %32 = tpu.iota {dimensions = array<i32: 0>} : vector<8x128xi32>
      %33 = tpu.iota {dimensions = array<i32: 1>} : vector<8x128xi32>
      %c8_i32 = arith.constant 8 : i32
      %34 = arith.muli %1, %c8_i32 : i32
      %c0_i32_16 = arith.constant 0 : i32
      %35 = arith.addi %34, %c0_i32_16 : i32
      %36 = vector.broadcast %35 : i32 to vector<8x128xi32>
      %37 = arith.addi %36, %32 : vector<8x128xi32>
      %c128_i32 = arith.constant 128 : i32
      %38 = vector.broadcast %c128_i32 : i32 to vector<8x128xi32>
      %39 = arith.muli %37, %38 : vector<8x128xi32>
      %40 = arith.addi %39, %33 : vector<8x128xi32>
      %c256_i32_17 = arith.constant 256 : i32
      %41 = vector.broadcast %c256_i32_17 : i32 to vector<8x128xi32>
      %42 = arith.cmpi slt, %40, %41 : vector<8x128xi32>
      %43 = arith.mulf %24, %31 : vector<8x128xf32>
      %c0_i32_18 = arith.constant 0 : i32
      %44 = vector.broadcast %c0_i32_18 : i32 to vector<8x128xi32>
      %45 = arith.cmpi eq, %14, %44 : vector<8x128xi32>
      %46 = arith.andi %45, %42 : vector<8x128xi1>
      %c0_19 = arith.constant 0 : index
      %c0_20 = arith.constant 0 : index
      %c0_21 = arith.constant 0 : index
      %c0_22 = arith.constant 0 : index
      %c0_23 = arith.constant 0 : index
      %47 = vector.load %arg5[%c0_19, %c0_20, %c0_21, %c0_22, %c0_23] : memref<1x1x3x8x128xf32, #tpu.memory_space<vmem>>, vector<1x1x1x8x128xf32>
      %48 = vector.shape_cast %47 : vector<1x1x1x8x128xf32> to vector<8x128xf32>
      %cst = arith.constant 0.000000e+00 : f32
      %49 = vector.broadcast %cst : f32 to vector<8x128xf32>
      %50 = arith.select %46, %43, %49 : vector<8x128xi1>, vector<8x128xf32>
      %51 = vector.shape_cast %50 : vector<8x128xf32> to vector<1x8x128xf32>
      %cst_24 = arith.constant dense<0.000000e+00> : vector<8x128xf32>
      %52 = vector.multi_reduction <add>, %51, %cst_24 [0] : vector<1x8x128xf32> to vector<8x128xf32>
      %53 = arith.addf %48, %52 : vector<8x128xf32>
      %c0_25 = arith.constant 0 : index
      %c0_26 = arith.constant 0 : index
      %c0_27 = arith.constant 0 : index
      %c0_28 = arith.constant 0 : index
      %c0_29 = arith.constant 0 : index
      %54 = vector.load %arg5[%c0_25, %c0_26, %c0_27, %c0_28, %c0_29] : memref<1x1x3x8x128xf32, #tpu.memory_space<vmem>>, vector<1x1x1x8x128xf32>
      %55 = vector.shape_cast %54 : vector<1x1x1x8x128xf32> to vector<8x128xf32>
      %56 = vector.shape_cast %53 : vector<8x128xf32> to vector<1x1x1x8x128xf32>
      tpu.vector_store %arg5[%c0_25, %c0_26, %c0_27, %c0_28, %c0_29], %56 {strides = array<i32>} : memref<1x1x3x8x128xf32, #tpu.memory_space<vmem>>, vector<1x1x1x8x128xf32>,
      %c0_30 = arith.constant 0 : index
      %c0_31 = arith.constant 0 : index
      %c0_32 = arith.constant 0 : index
      %c0_33 = arith.constant 0 : index
      %c0_34 = arith.constant 0 : index
      %57 = vector.load %arg6[%c0_30, %c0_31, %c0_32, %c0_33, %c0_34] : memref<1x1x3x8x128xf32, #tpu.memory_space<vmem>>, vector<1x1x1x8x128xf32>
      %58 = vector.shape_cast %57 : vector<1x1x1x8x128xf32> to vector<8x128xf32>
      %cst_35 = arith.constant 0.000000e+00 : f32
      %59 = vector.broadcast %cst_35 : f32 to vector<8x128xf32>
      %60 = arith.select %42, %43, %59 : vector<8x128xi1>, vector<8x128xf32>
      %61 = vector.shape_cast %60 : vector<8x128xf32> to vector<1x8x128xf32>
      %cst_36 = arith.constant dense<0.000000e+00> : vector<8x128xf32>
      %62 = vector.multi_reduction <add>, %61, %cst_36 [0] : vector<1x8x128xf32> to vector<8x128xf32>
      %63 = arith.addf %58, %62 : vector<8x128xf32>
      %c0_37 = arith.constant 0 : index
      %c0_38 = arith.constant 0 : index
      %c0_39 = arith.constant 0 : index
      %c0_40 = arith.constant 0 : index
      %c0_41 = arith.constant 0 : index
      %64 = vector.load %arg6[%c0_37, %c0_38, %c0_39, %c0_40, %c0_41] : memref<1x1x3x8x128xf32, #tpu.memory_space<vmem>>, vector<1x1x1x8x128xf32>
      %65 = vector.shape_cast %64 : vector<1x1x1x8x128xf32> to vector<8x128xf32>
      %66 = vector.shape_cast %63 : vector<8x128xf32> to vector<1x1x1x8x128xf32>
      tpu.vector_store %arg6[%c0_37, %c0_38, %c0_39, %c0_40, %c0_41], %66 {strides = array<i32>} : memref<1x1x3x8x128xf32, #tpu.memory_space<vmem>>, vector<1x1x1x8x128xf32>,
      %c0_42 = arith.constant 0 : index
      %c0_43 = arith.constant 0 : index
      %c0_44 = arith.constant 0 : index
      %c0_45 = arith.constant 0 : index
      %c0_46 = arith.constant 0 : index
      %67 = vector.load %arg7[%c0_42, %c0_43, %c0_44, %c0_45, %c0_46] : memref<1x1x3x8x128xf32, #tpu.memory_space<vmem>>, vector<1x1x1x8x128xf32>
      %68 = vector.shape_cast %67 : vector<1x1x1x8x128xf32> to vector<8x128xf32>
      %69 = arith.extui %46 : vector<8x128xi1> to vector<8x128xi32>
      %70 = arith.sitofp %69 : vector<8x128xi32> to vector<8x128xf32>
      %71 = vector.shape_cast %70 : vector<8x128xf32> to vector<1x8x128xf32>
      %cst_47 = arith.constant dense<0.000000e+00> : vector<8x128xf32>
      %72 = vector.multi_reduction <add>, %71, %cst_47 [0] : vector<1x8x128xf32> to vector<8x128xf32>
      %73 = arith.addf %68, %72 : vector<8x128xf32>
      %c0_48 = arith.constant 0 : index
      %c0_49 = arith.constant 0 : index
      %c0_50 = arith.constant 0 : index
      %c0_51 = arith.constant 0 : index
      %c0_52 = arith.constant 0 : index
      %74 = vector.load %arg7[%c0_48, %c0_49, %c0_50, %c0_51, %c0_52] : memref<1x1x3x8x128xf32, #tpu.memory_space<vmem>>, vector<1x1x1x8x128xf32>
      %75 = vector.shape_cast %74 : vector<1x1x1x8x128xf32> to vector<8x128xf32>
      %76 = vector.shape_cast %73 : vector<8x128xf32> to vector<1x1x1x8x128xf32>
      tpu.vector_store %arg7[%c0_48, %c0_49, %c0_50, %c0_51, %c0_52], %76 {strides = array<i32>} : memref<1x1x3x8x128xf32, #tpu.memory_space<vmem>>, vector<1x1x1x8x128xf32>,
      %77 = arith.mulf %26, %31 : vector<8x128xf32>
      %c1_i32_53 = arith.constant 1 : i32
      %78 = vector.broadcast %c1_i32_53 : i32 to vector<8x128xi32>
      %79 = arith.cmpi eq, %14, %78 : vector<8x128xi32>
      %80 = arith.andi %79, %42 : vector<8x128xi1>
      %c0_54 = arith.constant 0 : index
      %c0_55 = arith.constant 0 : index
      %c1_56 = arith.constant 1 : index
      %c0_57 = arith.constant 0 : index
      %c0_58 = arith.constant 0 : index
      %81 = vector.load %arg5[%c0_54, %c0_55, %c1_56, %c0_57, %c0_58] : memref<1x1x3x8x128xf32, #tpu.memory_space<vmem>>, vector<1x1x1x8x128xf32>
      %82 = vector.shape_cast %81 : vector<1x1x1x8x128xf32> to vector<8x128xf32>
      %cst_59 = arith.constant 0.000000e+00 : f32
      %83 = vector.broadcast %cst_59 : f32 to vector<8x128xf32>
      %84 = arith.select %80, %77, %83 : vector<8x128xi1>, vector<8x128xf32>
      %85 = vector.shape_cast %84 : vector<8x128xf32> to vector<1x8x128xf32>
      %cst_60 = arith.constant dense<0.000000e+00> : vector<8x128xf32>
      %86 = vector.multi_reduction <add>, %85, %cst_60 [0] : vector<1x8x128xf32> to vector<8x128xf32>
      %87 = arith.addf %82, %86 : vector<8x128xf32>
      %c0_61 = arith.constant 0 : index
      %c0_62 = arith.constant 0 : index
      %c1_63 = arith.constant 1 : index
      %c0_64 = arith.constant 0 : index
      %c0_65 = arith.constant 0 : index
      %88 = vector.load %arg5[%c0_61, %c0_62, %c1_63, %c0_64, %c0_65] : memref<1x1x3x8x128xf32, #tpu.memory_space<vmem>>, vector<1x1x1x8x128xf32>
      %89 = vector.shape_cast %88 : vector<1x1x1x8x128xf32> to vector<8x128xf32>
      %90 = vector.shape_cast %87 : vector<8x128xf32> to vector<1x1x1x8x128xf32>
      tpu.vector_store %arg5[%c0_61, %c0_62, %c1_63, %c0_64, %c0_65], %90 {strides = array<i32>} : memref<1x1x3x8x128xf32, #tpu.memory_space<vmem>>, vector<1x1x1x8x128xf32>,
      %c0_66 = arith.constant 0 : index
      %c0_67 = arith.constant 0 : index
      %c1_68 = arith.constant 1 : index
      %c0_69 = arith.constant 0 : index
      %c0_70 = arith.constant 0 : index
      %91 = vector.load %arg6[%c0_66, %c0_67, %c1_68, %c0_69, %c0_70] : memref<1x1x3x8x128xf32, #tpu.memory_space<vmem>>, vector<1x1x1x8x128xf32>
      %92 = vector.shape_cast %91 : vector<1x1x1x8x128xf32> to vector<8x128xf32>
      %cst_71 = arith.constant 0.000000e+00 : f32
      %93 = vector.broadcast %cst_71 : f32 to vector<8x128xf32>
      %94 = arith.select %42, %77, %93 : vector<8x128xi1>, vector<8x128xf32>
      %95 = vector.shape_cast %94 : vector<8x128xf32> to vector<1x8x128xf32>
      %cst_72 = arith.constant dense<0.000000e+00> : vector<8x128xf32>
      %96 = vector.multi_reduction <add>, %95, %cst_72 [0] : vector<1x8x128xf32> to vector<8x128xf32>
      %97 = arith.addf %92, %96 : vector<8x128xf32>
      %c0_73 = arith.constant 0 : index
      %c0_74 = arith.constant 0 : index
      %c1_75 = arith.constant 1 : index
      %c0_76 = arith.constant 0 : index
      %c0_77 = arith.constant 0 : index
      %98 = vector.load %arg6[%c0_73, %c0_74, %c1_75, %c0_76, %c0_77] : memref<1x1x3x8x128xf32, #tpu.memory_space<vmem>>, vector<1x1x1x8x128xf32>
      %99 = vector.shape_cast %98 : vector<1x1x1x8x128xf32> to vector<8x128xf32>
      %100 = vector.shape_cast %97 : vector<8x128xf32> to vector<1x1x1x8x128xf32>
      tpu.vector_store %arg6[%c0_73, %c0_74, %c1_75, %c0_76, %c0_77], %100 {strides = array<i32>} : memref<1x1x3x8x128xf32, #tpu.memory_space<vmem>>, vector<1x1x1x8x128xf32>,
      %c0_78 = arith.constant 0 : index
      %c0_79 = arith.constant 0 : index
      %c1_80 = arith.constant 1 : index
      %c0_81 = arith.constant 0 : index
      %c0_82 = arith.constant 0 : index
      %101 = vector.load %arg7[%c0_78, %c0_79, %c1_80, %c0_81, %c0_82] : memref<1x1x3x8x128xf32, #tpu.memory_space<vmem>>, vector<1x1x1x8x128xf32>
      %102 = vector.shape_cast %101 : vector<1x1x1x8x128xf32> to vector<8x128xf32>
      %103 = arith.extui %80 : vector<8x128xi1> to vector<8x128xi32>
      %104 = arith.sitofp %103 : vector<8x128xi32> to vector<8x128xf32>
      %105 = vector.shape_cast %104 : vector<8x128xf32> to vector<1x8x128xf32>
      %cst_83 = arith.constant dense<0.000000e+00> : vector<8x128xf32>
      %106 = vector.multi_reduction <add>, %105, %cst_83 [0] : vector<1x8x128xf32> to vector<8x128xf32>
      %107 = arith.addf %102, %106 : vector<8x128xf32>
      %c0_84 = arith.constant 0 : index
      %c0_85 = arith.constant 0 : index
      %c1_86 = arith.constant 1 : index
      %c0_87 = arith.constant 0 : index
      %c0_88 = arith.constant 0 : index
      %108 = vector.load %arg7[%c0_84, %c0_85, %c1_86, %c0_87, %c0_88] : memref<1x1x3x8x128xf32, #tpu.memory_space<vmem>>, vector<1x1x1x8x128xf32>
      %109 = vector.shape_cast %108 : vector<1x1x1x8x128xf32> to vector<8x128xf32>
      %110 = vector.shape_cast %107 : vector<8x128xf32> to vector<1x1x1x8x128xf32>
      tpu.vector_store %arg7[%c0_84, %c0_85, %c1_86, %c0_87, %c0_88], %110 {strides = array<i32>} : memref<1x1x3x8x128xf32, #tpu.memory_space<vmem>>, vector<1x1x1x8x128xf32>,
      %111 = arith.mulf %28, %31 : vector<8x128xf32>
      %c2_i32 = arith.constant 2 : i32
      %112 = vector.broadcast %c2_i32 : i32 to vector<8x128xi32>
      %113 = arith.cmpi eq, %14, %112 : vector<8x128xi32>
      %114 = arith.andi %113, %42 : vector<8x128xi1>
      %c0_89 = arith.constant 0 : index
      %c0_90 = arith.constant 0 : index
      %c2_91 = arith.constant 2 : index
      %c0_92 = arith.constant 0 : index
      %c0_93 = arith.constant 0 : index
      %115 = vector.load %arg5[%c0_89, %c0_90, %c2_91, %c0_92, %c0_93] : memref<1x1x3x8x128xf32, #tpu.memory_space<vmem>>, vector<1x1x1x8x128xf32>
      %116 = vector.shape_cast %115 : vector<1x1x1x8x128xf32> to vector<8x128xf32>
      %cst_94 = arith.constant 0.000000e+00 : f32
      %117 = vector.broadcast %cst_94 : f32 to vector<8x128xf32>
      %118 = arith.select %114, %111, %117 : vector<8x128xi1>, vector<8x128xf32>
      %119 = vector.shape_cast %118 : vector<8x128xf32> to vector<1x8x128xf32>
      %cst_95 = arith.constant dense<0.000000e+00> : vector<8x128xf32>
      %120 = vector.multi_reduction <add>, %119, %cst_95 [0] : vector<1x8x128xf32> to vector<8x128xf32>
      %121 = arith.addf %116, %120 : vector<8x128xf32>
      %c0_96 = arith.constant 0 : index
      %c0_97 = arith.constant 0 : index
      %c2_98 = arith.constant 2 : index
      %c0_99 = arith.constant 0 : index
      %c0_100 = arith.constant 0 : index
      %122 = vector.load %arg5[%c0_96, %c0_97, %c2_98, %c0_99, %c0_100] : memref<1x1x3x8x128xf32, #tpu.memory_space<vmem>>, vector<1x1x1x8x128xf32>
      %123 = vector.shape_cast %122 : vector<1x1x1x8x128xf32> to vector<8x128xf32>
      %124 = vector.shape_cast %121 : vector<8x128xf32> to vector<1x1x1x8x128xf32>
      tpu.vector_store %arg5[%c0_96, %c0_97, %c2_98, %c0_99, %c0_100], %124 {strides = array<i32>} : memref<1x1x3x8x128xf32, #tpu.memory_space<vmem>>, vector<1x1x1x8x128xf32>,
      %c0_101 = arith.constant 0 : index
      %c0_102 = arith.constant 0 : index
      %c2_103 = arith.constant 2 : index
      %c0_104 = arith.constant 0 : index
      %c0_105 = arith.constant 0 : index
      %125 = vector.load %arg6[%c0_101, %c0_102, %c2_103, %c0_104, %c0_105] : memref<1x1x3x8x128xf32, #tpu.memory_space<vmem>>, vector<1x1x1x8x128xf32>
      %126 = vector.shape_cast %125 : vector<1x1x1x8x128xf32> to vector<8x128xf32>
      %cst_106 = arith.constant 0.000000e+00 : f32
      %127 = vector.broadcast %cst_106 : f32 to vector<8x128xf32>
      %128 = arith.select %42, %111, %127 : vector<8x128xi1>, vector<8x128xf32>
      %129 = vector.shape_cast %128 : vector<8x128xf32> to vector<1x8x128xf32>
      %cst_107 = arith.constant dense<0.000000e+00> : vector<8x128xf32>
      %130 = vector.multi_reduction <add>, %129, %cst_107 [0] : vector<1x8x128xf32> to vector<8x128xf32>
      %131 = arith.addf %126, %130 : vector<8x128xf32>
      %c0_108 = arith.constant 0 : index
      %c0_109 = arith.constant 0 : index
      %c2_110 = arith.constant 2 : index
      %c0_111 = arith.constant 0 : index
      %c0_112 = arith.constant 0 : index
      %132 = vector.load %arg6[%c0_108, %c0_109, %c2_110, %c0_111, %c0_112] : memref<1x1x3x8x128xf32, #tpu.memory_space<vmem>>, vector<1x1x1x8x128xf32>
      %133 = vector.shape_cast %132 : vector<1x1x1x8x128xf32> to vector<8x128xf32>
      %134 = vector.shape_cast %131 : vector<8x128xf32> to vector<1x1x1x8x128xf32>
      tpu.vector_store %arg6[%c0_108, %c0_109, %c2_110, %c0_111, %c0_112], %134 {strides = array<i32>} : memref<1x1x3x8x128xf32, #tpu.memory_space<vmem>>, vector<1x1x1x8x128xf32>,
      %c0_113 = arith.constant 0 : index
      %c0_114 = arith.constant 0 : index
      %c2_115 = arith.constant 2 : index
      %c0_116 = arith.constant 0 : index
      %c0_117 = arith.constant 0 : index
      %135 = vector.load %arg7[%c0_113, %c0_114, %c2_115, %c0_116, %c0_117] : memref<1x1x3x8x128xf32, #tpu.memory_space<vmem>>, vector<1x1x1x8x128xf32>
      %136 = vector.shape_cast %135 : vector<1x1x1x8x128xf32> to vector<8x128xf32>
      %137 = arith.extui %114 : vector<8x128xi1> to vector<8x128xi32>
      %138 = arith.sitofp %137 : vector<8x128xi32> to vector<8x128xf32>
      %139 = vector.shape_cast %138 : vector<8x128xf32> to vector<1x8x128xf32>
      %cst_118 = arith.constant dense<0.000000e+00> : vector<8x128xf32>
      %140 = vector.multi_reduction <add>, %139, %cst_118 [0] : vector<1x8x128xf32> to vector<8x128xf32>
      %141 = arith.addf %136, %140 : vector<8x128xf32>
      %c0_119 = arith.constant 0 : index
      %c0_120 = arith.constant 0 : index
      %c2_121 = arith.constant 2 : index
      %c0_122 = arith.constant 0 : index
      %c0_123 = arith.constant 0 : index
      %142 = vector.load %arg7[%c0_119, %c0_120, %c2_121, %c0_122, %c0_123] : memref<1x1x3x8x128xf32, #tpu.memory_space<vmem>>, vector<1x1x1x8x128xf32>
      %143 = vector.shape_cast %142 : vector<1x1x1x8x128xf32> to vector<8x128xf32>
      %144 = vector.shape_cast %141 : vector<8x128xf32> to vector<1x1x1x8x128xf32>
      tpu.vector_store %arg7[%c0_119, %c0_120, %c2_121, %c0_122, %c0_123], %144 {strides = array<i32>} : memref<1x1x3x8x128xf32, #tpu.memory_space<vmem>>, vector<1x1x1x8x128xf32>,
    } else {
    }
    return
  }
  func.func @transform_0(%arg0: i32, %arg1: i32, %arg2: i32) -> (i32, i32, i32, i32) {
    %c1_i32 = arith.constant 1 : i32
    %0 = arith.muli %arg1, %c1_i32 : i32
    %1 = arith.addi %0, %arg2 : i32
    %c0_i32 = arith.constant 0 : i32
    %c0_i32_0 = arith.constant 0 : i32
    %c0_i32_1 = arith.constant 0 : i32
    return %arg0, %c0_i32, %1, %c0_i32_0 : i32, i32, i32, i32
  }
  func.func @transform_1(%arg0: i32, %arg1: i32, %arg2: i32) -> (i32, i32, i32) {
    %c1_i32 = arith.constant 1 : i32
    %0 = arith.muli %arg1, %c1_i32 : i32
    %1 = arith.addi %0, %arg2 : i32
    %c0_i32 = arith.constant 0 : i32
    %c0_i32_0 = arith.constant 0 : i32
    return %arg0, %1, %c0_i32 : i32, i32, i32
  }
  func.func @transform_2(%arg0: i32, %arg1: i32, %arg2: i32) -> (i32, i32, i32, i32, i32) {
    %c0_i32 = arith.constant 0 : i32
    %c0_i32_0 = arith.constant 0 : i32
    %c0_i32_1 = arith.constant 0 : i32
    %c0_i32_2 = arith.constant 0 : i32
    return %arg0, %arg1, %c0_i32, %c0_i32_0, %c0_i32_1 : i32, i32, i32, i32, i32
  }
  func.func @transform_3(%arg0: i32, %arg1: i32, %arg2: i32) -> (i32, i32, i32, i32, i32) {
    %c0_i32 = arith.constant 0 : i32
    %c0_i32_0 = arith.constant 0 : i32
    %c0_i32_1 = arith.constant 0 : i32
    %c0_i32_2 = arith.constant 0 : i32
    return %arg0, %arg1, %c0_i32, %c0_i32_0, %c0_i32_1 : i32, i32, i32, i32, i32
  }
  func.func @transform_4(%arg0: i32, %arg1: i32, %arg2: i32) -> (i32, i32, i32, i32, i32) {
    %c0_i32 = arith.constant 0 : i32
    %c0_i32_0 = arith.constant 0 : i32
    %c0_i32_1 = arith.constant 0 : i32
    %c0_i32_2 = arith.constant 0 : i32
    return %arg0, %arg1, %c0_i32, %c0_i32_0, %c0_i32_1 : i32, i32, i32, i32, i32
  }
}

</mosaic_0001>

<bundles_post_ra>
// kernel: tpu_custom_call.1
= control target key start
LH: loop header
LB: loop body
LE: loop exit
PB: predicated region body
PF: predicated region fallthrough
CT: control target
= control target key end

     0   :  { %s1423_s0 = inlined_call_operand.hbm [shape: f32[2,3,8,128], index: 0, kind: input, shape index: {}]   ;;  %s1424_s1 = inlined_call_operand.hbm [shape: s32[2,8,128], index: 1, kind: input, shape index: {}]   ;;  %s1425_s2 = inlined_call_operand.hbm [shape: f32[2,1,3,8,128], index: 2, kind: output, shape index: {0}]   ;;  %s1426_s3 = inlined_call_operand.hbm [shape: f32[2,1,3,8,128], index: 3, kind: output, shape index: {1}]   ;;  %s1427_s4 = inlined_call_operand.hbm [shape: f32[2,1,3,8,128], index: 4, kind: output, shape index: {2}]  }
   0x1   :  { %1430 = sst [smem:[#allocation17_spill]] %s1423_s0 }
   0x2   :  { %10 = vsyncpa [#allocation3], 0 }
   0x3   :  { %12 = vsyncpa [#allocation3 + $0x1], 0 }
   0x4   :  { %13 = vsyncpa [#allocation6], 0 }
   0x5   :  { %15 = vsyncpa [#allocation6 + $0x1], 0 }
   0x6   :  { %16 = vsyncpa [#allocation4], 0 }
   0x7   :  { %18 = vsyncpa [#allocation4 + $0x1], 0 }
   0x8   :  { %19 = vsyncpa [#allocation9], 0 }
   0x9   :  { %21 = vsyncpa [#allocation9 + $0x1], 0  ;;  %s1125_s15 = smov 0   ;;  %s1127_s16 = smov 0  }
   0xa   :  { %s1129_s17 = smov 0   ;;  %s1131_s18 = smov 0  }
   0xb   :  { %s1133_s19 = smov 0   ;;  %s1135_s20 = smov 0  }
   0xc LB: > { %s1156_s21 = sadd.s32 4294967295, %s1088_s20   ;;  %s1428_s22 = sadd.s32 4294967294, %s1088_s20   ;;  %s1088_s20 = sphi %s1135_s20, %s27_s20   ;;  %s1084_s19 = sphi %s1133_s19, %s1453_s19   ;;  %s1080_s18 = sphi %s1131_s18, %s1452_s18   ;;  %s1076_s17 = sphi %s1129_s17, %s1451_s17   ;;  %s1072_s16 = sphi %s1127_s16, %s1450_s16   ;;  %s1068_s15 = sphi %s1125_s15, %s1449_s15  }
   0xd   : > { %s46_s23 = sadd.s32 1, %s1084_s19  ;;  %s57_s24 = sadd.s32 1, %s1076_s17 }
   0xe   : > { %p48_p0 = scmp.ge.s32.totalorder %s46_s23, 2  ;;  %p64_p1 = scmp.ne.s32.totalorder %s1076_s17, %s1072_s16 }
   0xf   : > { %p65_p2 = scmp.eq.s32.totalorder %s1088_s20, 0  ;;  %p70_p3 = scmp.ne.s32.totalorder %s1072_s16, %s1068_s15 }
  0x10   : > { %s1455_s23 = smov (%p48_p0, %s46_s23), 0  ;;  %p71_p5 = scmp.eq.s32.totalorder %s1156_s21, 0 }
  0x11   : > { %1431 = sst [smem:[#allocation15_spill]] %s1455_s23  ;;  %p1168_p4 = por %p65_p2, %p64_p1 }
  0x12   : > { %s52_s26 = ssub.s32 %s1084_s19, %s1455_s23  ;;  %p126_p6 = scmp.eq.s32.totalorder %s1156_s21, 1 }
  0x13   : > { %p55_p7 = scmp.eq.s32.totalorder %s52_s26, 0  ;;  %p1176_p8 = por %p71_p5, %p70_p3 }
  0x14   : > { %p1180_p9 = por %p126_p6, %p64_p1  ;;  %p132_p10 = scmp.eq.s32.totalorder %s1428_s22, 1 }
  0x15   : > { %s1187_s29 = scalar_select %p55_p7, %s1076_s17, %s57_s24  }
  0x16   : > { %p1189_p11 = por %p132_p10, %p70_p3  ;;  %p751_p12 = scmp.ge.s32.totalorder %s1088_s20, 2 }
  0x17   : > { %1435 = sst [smem:[#allocation16_spill]] %s1187_s29  ;;  %p829_p13 = scmp.lt.s32.totalorder %s1088_s20, 2 }
  0x18   : > { %s1196_s5 = sand.u32 1, %s1076_s17   ;;  %s797_s7 = smul.u32 384, %s1084_s19 }
  0x19   : > { %s796_s6 = smul.u32 24, %s1196_s5  ;;  %p1202_p0 = pnand %p829_p13, %p1168_p4 }
  0x1a   : > { %s1438_s0 = sld [smem:[#allocation17_spill]]  ;;  %p755_p1 = scmp.ge.s32.totalorder %s1088_s20, 1 }
  0x1b   : > { %s212_s12 = scalar_lea.vmem [#allocation2], %s796_s6  ;;  %s209_s14 = scalar_lea.sflag [#allocation3], %s1196_s5 }
  0x1c   : > { %s221_s13 = sshll.u32 %s212_s12, 4  ;;  %p894_p2 = pneg %p1202_p0  ;;  %s222_s13 = int_to_ptr.vmem [resolvable:$true] %s221_s13 }
  0x1d   : > { %s905_s24 = scalar_lea.vmem %s222_s13, 384  ;;  %s1090_s25 = smov [#allocation2]  }
  0x1e   : > { %p906_p3 = scmp.ne.s32.totalorder %s222_s13, %s905_s24  ;;  %s910_s26 = sshll.u32 %s1090_s25, 4  ;;  %s911_s26 = int_to_ptr.vmem [resolvable:$false] %s910_s26 }
  0x1f   : > { %s912_s9 = scalar_lea.vmem %s911_s26, 768  ;;  %p913_p6 = scmp.lt.s32.totalorder %s222_s13, %s911_s26 }
  0x20   : > { %s220_s11 = scalar_lea.hbm %s1438_s0, %s797_s7  ;;  %p908_p4 = pnand %p906_p3, %p894_p2 }
  0x21   : > { %p914_p7 = scmp.lt.s32.totalorder %s912_s9, %s905_s24 }
  0x22   : > { %p909_p5 = pneg %p908_p4 }
  0x23   : > { %p915_p10 = por %p914_p7, %p913_p6 }
  0x25   : > { %p916_p13 = pnand %p915_p10, %p909_p5 }
  0x27   : > { %919 = shalt.err (!%p916_p13)
}
  0x28   : > { %s1091_s6 = smov 128   ;;  %s1092_s7 = smov 8  }
  0x29   : > { %815 = dma.hbm_to_vmem [thread:$0]  (!%p1202_p0), %s220_s11, 384, %s222_s13, %s209_s14, %s1091_s6, %s1091_s6, %s1092_s7  }
  0x2a   : > { %p249_p3 = scmp.lt.s32.totalorder %s1088_s20, 3  ;;  %s753_s10 = sshll.u32 %s1196_s5, 3 }
  0x2b   : > { %s754_s12 = sshll.u32 %s1084_s19, 7  ;;  %s235_s22 = scalar_lea.vmem [#allocation5], %s753_s10 }
  0x2c   : > { %p1223_p4 = pnand %p755_p1, %p249_p3  ;;  %s242_s9 = scalar_lea.hbm %s1424_s1, %s754_s12 }
  0x2d   : > { %s244_s0 = sshll.u32 %s235_s22, 4  ;;  %s232_s23 = scalar_lea.sflag [#allocation6], %s1196_s5  ;;  %s245_s0 = int_to_ptr.vmem [resolvable:$true] %s244_s0 }
  0x2e   : > { %s933_s29 = scalar_lea.vmem %s245_s0, 128  ;;  %s1093_s11 = smov [#allocation5]  }
  0x2f   : > { %p934_p5 = scmp.ne.s32.totalorder %s245_s0, %s933_s29  ;;  %s938_s13 = sshll.u32 %s1093_s11, 4  ;;  %s939_s13 = int_to_ptr.vmem [resolvable:$false] %s938_s13 }
  0x30   : > { %s940_s14 = scalar_lea.vmem %s939_s13, 256  ;;  %p941_p1 = scmp.lt.s32.totalorder %s245_s0, %s939_s13 }
  0x31   : > { %p936_p6 = pnand %p934_p5, %p894_p2  ;;  %p942_p10 = scmp.lt.s32.totalorder %s940_s14, %s933_s29 }
  0x33   : > { %p937_p7 = pneg %p936_p6  ;;  %p943_p13 = por %p942_p10, %p941_p1 }
  0x35   : > { %p944_p3 = pnand %p943_p13, %p937_p7 }
  0x37   : > { %947 = shalt.err (!%p944_p3)
}
  0x38   : > { %818 = dma.hbm_to_vmem [thread:$0]  (!%p1202_p0), %s242_s9, 128, %s245_s0, %s232_s23  }
  0x39   : > { %253 = sbr.rel (%p1223_p4) target bundleno = 169 (0xa9), region = 28  ;;  %s1239_s22 = sand.u32 (!%p1223_p4), 1, %s1072_s16  }
  0x3a   : > { %s1242_s5 = smul.u32 (!%p1223_p4), 24, %s1239_s22  ;;  %s256_s6 = scalar_lea.sflag (!%p1223_p4), [#allocation3], %s1239_s22 }
  0x3c   : > { %s259_s29 = scalar_lea.vmem (!%p1223_p4), [#allocation2], %s1242_s5 }
  0x3e   : > { %1051 = dma.done.wait (%p1176_p8), %s256_s6, 384  }
  0x3f   : > { %1053 = vsyncadd (%p1176_p8), %s256_s6, 4294966912  ;;  %s756_s0 = sshll.u32 %s1239_s22, 3  ;;  %s265_s23 = scalar_lea.sflag [#allocation6], %s1239_s22 }
  0x40   : > { %s268_s8 = scalar_lea.vmem [#allocation5], %s756_s0 }
  0x41   : > { %1055 = dma.done.wait (%p1176_p8), %s265_s23, 128  }
  0x42   : > { %1057 = vsyncadd (%p1176_p8), %s265_s23, 4294967168  ;;  %v431_v0 = vlaneseq  ;;  %v412_v5 = vld [vmem:[%s259_s29] sm:$0xff]  ;;  %v774_v6 = vld [vmem:[%s259_s29 + $0x8] sm:$0xff]  ;;  %v1094_v12 = vmov 0.0   ;;  %s1278_s27 = scalar_lea.vmem [#allocation10], %s1242_s5  ;;  %s509_s7 = sand.u32 1, %s1156_s21  }
  0x43   : > { %v775_v7 = vld [vmem:[%s259_s29 + $0x10] sm:$0xff]  ;;  %v417_v8 = vmax.f32 %v412_v5, %v774_v6  ;;  %s799_s10 = smul.u32 384, %s1080_s18  ;;  %s300_s12 = scalar_lea.vmem [#allocation8], %s1242_s5 }
  0x44   : > { %v432_v1 = vshrl.u32 %v431_v0, 7  ;;  %v434_v2 = vand.u32 127, %v431_v0  ;;  %v411_v9 = vld [vmem:[%s268_s8] sm:$0xff]  ;;  %s548_s24 = sshll.u32 %s300_s12, 4  ;;  %s566_s25 = sshll.u32 %s1278_s27, 4  ;;  %s1301_s24 = int_to_ptr.vmem [resolvable:$true] %s548_s24  ;;  %s1312_s25 = int_to_ptr.vmem [resolvable:$true] %s566_s25 }
  0x45   : > { %vm442_vm1 = vcmp.eq.s32.totalorder %v411_v9, 0  ;;  %vm461_vm2 = vcmp.eq.s32.totalorder %v411_v9, 1  ;;  %vm483_vm3 = vcmp.eq.s32.totalorder %v411_v9, 2  ;;  %v418_v10 = vmax.f32 %v417_v8, %v775_v7  ;;  %s1295_s18 = scalar_lea.hbm %s1426_s3, %s799_s10  ;;  %s1298_s21 = scalar_lea.vmem [#allocation7], %s1242_s5 }
  0x46   : > { %v438_v3 = vmul.u32 128, %v432_v1  ;;  %s530_s11 = sshll.u32 %s1298_s21, 4  ;;  %s1310_s6 = scalar_lea.hbm %s1427_s4, %s799_s10  ;;  %s1320_s11 = int_to_ptr.vmem [resolvable:$true] %s530_s11 }
  0x47   : > { %v419_v15 = vsub.f32 %v412_v5, %v418_v10  ;;  %v422_v16 = vsub.f32 %v774_v6, %v418_v10  ;;  %v425_v17 = vsub.f32 %v775_v7, %v418_v10  ;;  %s1318_s0 = scalar_lea.hbm %s1425_s2, %s799_s10  ;;  %s1322_s23 = scalar_lea.sflag [#allocation9], %s509_s7 }
  0x48   : > { %v439_v4 = vadd.s32 %v438_v3, %v434_v2  ;;  %s948_s8 = scalar_lea.vmem %s1301_s24, 384 }
  0x49   : > { %v420_v21 = vmul.f32 1.442695, %v419_v15  ;;  %v423_v22 = vmul.f32 1.442695, %v422_v16  ;;  %v426_v23 = vmul.f32 1.442695, %v425_v17  ;;  %p949_p8 = scmp.ne.s32.totalorder %s1301_s24, %s948_s8 }
  0x4a   : > { %vm440_vm0 = vcmp.lt.s32.totalorder %v439_v4, 256 }
  0x4b   : > { %vm1257_vm4 = vmand %vm442_vm1, %vm440_vm0  ;;  %884 = vpow2.f32 %v420_v21  ;;  %p950_p0 = pnand %p949_p8, %p1180_p9 }
  0x4c   : > { %v776_v13 = vsel %vm1257_vm4, 1.0, %v1094_v12  ;;  %vm1264_vm5 = vmand %vm461_vm2, %vm440_vm0  ;;  %886 = vpow2.f32 %v423_v22 }
  0x4d   : > { %vm1269_vm6 = vmand %vm483_vm3, %vm440_vm0  ;;  %v782_v19 = vsel %vm1264_vm5, 1.0, %v1094_v12  ;;  %459 = vst [vmem:[%s1278_s27] sm:$0xff] %v776_v13  ;;  %888 = vpow2.f32 %v426_v23  ;;  %p951_p2 = pneg %p950_p0 }
  0x4e   : > { %v789_v20 = vsel %vm1269_vm6, 1.0, %v1094_v12  ;;  %783 = vst [vmem:[%s1278_s27 + $0x8] sm:$0xff] %v782_v19 }
  0x4f   : > { %790 = vst [vmem:[%s1278_s27 + $0x10] sm:$0xff] %v789_v20  ;;  %s1095_s27 = smov [#allocation8]  }
  0x50   : > { %s952_s26 = sshll.u32 %s1095_s27, 4  ;;  %s953_s26 = int_to_ptr.vmem [resolvable:$false] %s952_s26 }
  0x51   : > { %s954_s9 = scalar_lea.vmem %s953_s26, 768  ;;  %p955_p4 = scmp.lt.s32.totalorder %s1301_s24, %s953_s26 }
  0x52   : > { %p956_p5 = scmp.lt.s32.totalorder %s954_s9, %s948_s8 }
  0x54   : > { %p957_p6 = por %p956_p5, %p955_p4 }
  0x56   : > { %p958_p7 = pnand %p957_p6, %p951_p2 }
  0x58   : > { %v885_v24 = vpop.eup %884 }
  0x59   : > { %v887_v25 = vpop.eup %886 }
  0x5a   : > { %v889_v26 = vpop.eup %888  ;;  %v428_v27 = vadd.f32 %v887_v25, %v885_v24 }
  0x5c   : > { %v429_v28 = vadd.f32 %v889_v26, %v428_v27 }
  0x5e   : > { %890 = vrcp.f32 %v429_v28 }
  0x6b   : > { %v891_v29 = vpop.eup %890 }
  0x6c   : > { %v441_v30 = vmul.f32 %v891_v29, %v885_v24  ;;  %v460_v31 = vmul.f32 %v891_v29, %v887_v25  ;;  %v482_v32 = vmul.f32 %v891_v29, %v889_v26 }
  0x6e   : > { %v450_v33 = vsel %vm440_vm0, %v441_v30, 0.0  ;;  %v471_v34 = vsel %vm440_vm0, %v460_v31, 0.0  ;;  %v493_v35 = vsel %vm440_vm0, %v482_v32, 0.0  ;;  %v445_v36 = vsel %vm1257_vm4, %v441_v30, 0.0 }
  0x6f   : > { %v465_v37 = vsel %vm1264_vm5, %v460_v31, 0.0  ;;  %v487_v38 = vsel %vm1269_vm6, %v482_v32, 0.0  ;;  %453 = vst [vmem:[%s300_s12] sm:$0xff] %v450_v33  ;;  %780 = vst [vmem:[%s300_s12 + $0x8] sm:$0xff] %v471_v34 }
  0x70   : > { %787 = vst [vmem:[%s300_s12 + $0x10] sm:$0xff] %v493_v35  ;;  %448 = vst [vmem:[%s1298_s21] sm:$0xff] %v445_v36 }
  0x71   : > { %961 = shalt.err (!%p958_p7)
}
  0x72   : > { %s962_s7 = scalar_lea.hbm %s1295_s18, 384  ;;  %s966_s13 = scalar_lea.hbm %s1426_s3, 768 }
  0x73   : > { %p963_p1 = scmp.ne.s32.totalorder %s1295_s18, %s962_s7  ;;  %p967_p3 = scmp.lt.s32.totalorder %s1295_s18, %s1426_s3 }
  0x74   : > { %p968_p8 = scmp.lt.s32.totalorder %s966_s13, %s962_s7 }
  0x75   : > { %p964_p10 = pnand %p963_p1, %p1180_p9 }
  0x76   : > { %p969_p0 = por %p968_p8, %p967_p3 }
  0x77   : > { %p965_p13 = pneg %p964_p10 }
  0x79   : > { %p970_p2 = pnand %p969_p0, %p965_p13 }
  0x7b   : > { %973 = shalt.err (!%p970_p2)
}
  0x7c   : > { %s1096_s29 = smov 128   ;;  %s1097_s8 = smov 8   ;;  %778 = vst [vmem:[%s1298_s21 + $0x8] sm:$0xff] %v465_v37  ;;  %785 = vst [vmem:[%s1298_s21 + $0x10] sm:$0xff] %v487_v38 }
  0x7d   : > { %807 = dma.vmem_to_hbm [thread:$0]  (%p1180_p9), %s1301_s24, 384, %s1295_s18, %s1322_s23, %s1096_s29, %s1096_s29, %s1097_s8  }
  0x7e   : > { %s974_s27 = scalar_lea.vmem %s1312_s25, 384  ;;  %s1098_s26 = smov [#allocation10]  }
  0x7f   : > { %p975_p4 = scmp.ne.s32.totalorder %s1312_s25, %s974_s27  ;;  %s978_s9 = sshll.u32 %s1098_s26, 4  ;;  %s979_s9 = int_to_ptr.vmem [resolvable:$false] %s978_s9 }
  0x80   : > { %s980_s7 = scalar_lea.vmem %s979_s9, 768  ;;  %p981_p7 = scmp.lt.s32.totalorder %s1312_s25, %s979_s9 }
  0x81   : > { %p976_p5 = pnand %p975_p4, %p1180_p9  ;;  %p982_p1 = scmp.lt.s32.totalorder %s980_s7, %s974_s27 }
  0x83   : > { %p977_p6 = pneg %p976_p5  ;;  %p983_p10 = por %p982_p1, %p981_p7 }
  0x85   : > { %p984_p13 = pnand %p983_p10, %p977_p6 }
  0x87   : > { %987 = shalt.err (!%p984_p13)
}
  0x88   : > { %s988_s24 = scalar_lea.hbm %s1310_s6, 384  ;;  %s992_s10 = scalar_lea.hbm %s1427_s4, 768 }
  0x89   : > { %p989_p3 = scmp.ne.s32.totalorder %s1310_s6, %s988_s24  ;;  %p993_p2 = scmp.lt.s32.totalorder %s1310_s6, %s1427_s4 }
  0x8a   : > { %p994_p4 = scmp.lt.s32.totalorder %s992_s10, %s988_s24 }
  0x8b   : > { %p990_p8 = pnand %p989_p3, %p1180_p9 }
  0x8c   : > { %p995_p5 = por %p994_p4, %p993_p2 }
  0x8d   : > { %p991_p0 = pneg %p990_p8 }
  0x8f   : > { %p996_p6 = pnand %p995_p5, %p991_p0 }
  0x91   : > { %999 = shalt.err (!%p996_p6)
}
  0x92   : > { %808 = dma.vmem_to_hbm [thread:$0]  (%p1180_p9), %s1312_s25, 384, %s1310_s6, %s1322_s23, %s1096_s29, %s1096_s29, %s1097_s8  }
  0x93   : > { %s505_s14 = scalar_lea.sflag [#allocation4], %s1239_s22  ;;  %s1000_s5 = scalar_lea.vmem %s1320_s11, 384 }
  0x94   : > { %p1001_p7 = scmp.ne.s32.totalorder %s1320_s11, %s1000_s5  ;;  %s1099_s27 = smov [#allocation7]  }
  0x95   : > { %s1004_s26 = sshll.u32 %s1099_s27, 4  ;;  %s1005_s26 = int_to_ptr.vmem [resolvable:$false] %s1004_s26 }
  0x96   : > { %p1002_p1 = pnand %p1001_p7, %p1180_p9  ;;  %s1006_s9 = scalar_lea.vmem %s1005_s26, 768 }
  0x97   : > { %p1007_p13 = scmp.lt.s32.totalorder %s1320_s11, %s1005_s26  ;;  %p1008_p3 = scmp.lt.s32.totalorder %s1006_s9, %s1000_s5 }
  0x98   : > { %p1003_p10 = pneg %p1002_p1 }
  0x99   : > { %p1009_p8 = por %p1008_p3, %p1007_p13 }
  0x9b   : > { %p1010_p0 = pnand %p1009_p8, %p1003_p10 }
  0x9d   : > { %1013 = shalt.err (!%p1010_p0)
}
  0x9e   : > { %s1014_s25 = scalar_lea.hbm %s1318_s0, 384  ;;  %s1018_s23 = scalar_lea.hbm %s1425_s2, 768 }
  0x9f   : > { %p1015_p2 = scmp.ne.s32.totalorder %s1318_s0, %s1014_s25  ;;  %p1019_p6 = scmp.lt.s32.totalorder %s1318_s0, %s1425_s2 }
  0xa0   : > { %p1020_p7 = scmp.lt.s32.totalorder %s1018_s23, %s1014_s25 }
  0xa1   : > { %p1016_p4 = pnand %p1015_p2, %p1180_p9 }
  0xa2   : > { %p1021_p1 = por %p1020_p7, %p1019_p6 }
  0xa3   : > { %p1017_p5 = pneg %p1016_p4 }
  0xa5   : > { %p1022_p10 = pnand %p1021_p1, %p1017_p5 }
  0xa7   : > { %1025 = shalt.err (!%p1022_p10)
}
  0xa8   : > { %806 = dma.vmem_to_hbm [thread:$0]  (%p1180_p9), %s1320_s11, 384, %s1318_s0, %s505_s14, %s1096_s29, %s1096_s29, %s1097_s8  }
  0xa9 PF: > { %s581_s18 = sand.u32 1, %s1068_s15   ;;  %p820_p13 = pnand %p751_p12, %p1189_p11 }
  0xaa   : > { %s582_s21 = scalar_lea.sflag [#allocation4], %s581_s18 }
  0xab   : > { %p821_p3 = pneg %p820_p13 }
  0xad   : > { %1059 = dma.done.wait (%p821_p3), %s582_s21, 384  }
  0xae   : > { %1061 = vsyncadd (%p821_p3), %s582_s21, 4294966912  ;;  %s1446_s28 = sadd.s32 4294967294, %s1088_s20  }
  0xaf   : > { %s590_s10 = sand.u32 1, %s1446_s28  }
  0xb0   : > { %s591_s12 = scalar_lea.sflag [#allocation9], %s590_s10 }
  0xb1   : > { %1063 = dma.done.wait (%p821_p3), %s591_s12, 768  }
  0xb2   : > { %1065 = vsyncadd (%p821_p3), %s591_s12, 4294966528  ;;  %s27_s20 = sadd.s32 1, %s1088_s20   ;;  %s1447_s11 = sld [smem:[#allocation16_spill]] }
  0xb3   : > { %p24_p9 = scmp.ge.s32.totalorder %s27_s20, 4   ;;  %s1448_s30 = sld [smem:[#allocation15_spill]] }
  0xb4   : > { %s1449_s15 = smov %s1072_s16  ;;  %s1450_s16 = smov %s1076_s17 }
  0xb5   : > { %s1452_s18 = smov %s1084_s19  ;;  %26 = sbr.rel (!%p24_p9) target bundleno = 12 (0xc), region = 146 }
  0xb8   : > { %s1451_s17 = smov %s1447_s11 }
  0xb9   : > { %s1453_s19 = smov %s1448_s30 }
  0xba   :  { %605 = vsyncpa [#allocation3], 1 }
  0xbb   :  { %607 = vsyncpa [#allocation3 + $0x1], 1 }
  0xbc   :  { %608 = vsyncpa [#allocation6], 1 }
  0xbd   :  { %610 = vsyncpa [#allocation6 + $0x1], 1 }
  0xbe   :  { %611 = vsyncpa [#allocation4], 1 }
  0xbf   :  { %613 = vsyncpa [#allocation4 + $0x1], 1 }
  0xc0   :  { %614 = vsyncpa [#allocation9], 1 }
  0xc1   :  { %616 = vsyncpa [#allocation9 + $0x1], 1 }

</bundles_post_ra>
